<compile_context>
chip_gen: v5e
topology: v5e:2x2
jax: 0.10.0
libtpu: 0.0.40
codegen_flags: <defaults>
</compile_context>

<pallas_src>
import functools

import jax
import jax.numpy as jnp
from jax.experimental import pallas as pl
from jax.experimental.pallas import tpu as pltpu


def _round_up(x: int, m: int) -> int:
    return ((x + m - 1) // m) * m


def _fused_mlp_kernel(*refs, num_layers: int):
    """refs = (x, w1, b1, w2, b2, ..., wN, bN, out).

    Computes out = LN(...ReLU(L2(ReLU(L1(x))))...) entirely in VMEM/vregs.
    """
    x_ref = refs[0]
    o_ref = refs[-1]
    h = x_ref[...]
    for i in range(num_layers):
        w_ref = refs[1 + 2 * i]
        b_ref = refs[2 + 2 * i]
        h = jnp.dot(h, w_ref[...], preferred_element_type=jnp.float32)
        h = h + b_ref[...]                      # (1, dout) broadcasts over batch
        if i != num_layers - 1:                 # ReLU on all but the last layer
            h = jnp.maximum(h, 0.0)
    o_ref[...] = h.astype(o_ref.dtype)


def fused_mlp(x, params):
    """Fused forward pass.  x: [B, Din]; params: list of (W[i]: [di, di+1], b[i])."""
    batch, din = x.shape
    num_layers = len(params)
    dims = [din] + [w.shape[1] for (w, _) in params]

    # Padded, lane-dense shapes: batch -> multiple of 8, features -> mult of 128.
    b_pad = _round_up(batch, 8)
    dims_pad = [_round_up(d, 128) for d in dims]

    # Zero-padding keeps the math exact in the un-padded window:
    # padded weight rows/cols and padded bias entries are zero, so padded output
    # columns stay zero through every layer; padded batch rows are sliced away.
    x_p = jnp.zeros((b_pad, dims_pad[0]), x.dtype).at[:batch, :din].set(x)

    operands = [x_p]
    in_specs = [
        pl.BlockSpec((b_pad, dims_pad[0]), lambda: (0, 0),
                     memory_space=pltpu.MemorySpace.VMEM)
    ]

    flops = 0
    bytes_accessed = x_p.size * 4
    for i, (w, b) in enumerate(params):
        di, do = dims_pad[i], dims_pad[i + 1]
        w_p = jnp.zeros((di, do), w.dtype).at[: w.shape[0], : w.shape[1]].set(w)
        b_p = jnp.zeros((1, do), b.dtype).at[0, : b.shape[0]].set(b)
        operands += [w_p, b_p]
        in_specs += [
            pl.BlockSpec((di, do), lambda: (0, 0),
                         memory_space=pltpu.MemorySpace.VMEM),
            pl.BlockSpec((1, do), lambda: (0, 0),
                         memory_space=pltpu.MemorySpace.VMEM),
        ]
        flops += 2 * b_pad * di * do
        bytes_accessed += (di * do + do) * 4

    out_pad_shape = (b_pad, dims_pad[-1])
    bytes_accessed += out_pad_shape[0] * out_pad_shape[1] * 4

    kernel = functools.partial(_fused_mlp_kernel, num_layers=num_layers)
    out_p = pl.pallas_call(
        kernel,
        out_shape=jax.ShapeDtypeStruct(out_pad_shape, x.dtype),
        in_specs=in_specs,
        out_specs=pl.BlockSpec(out_pad_shape, lambda: (0, 0),
                               memory_space=pltpu.MemorySpace.VMEM),
        cost_estimate=pl.CostEstimate(
            flops=int(flops), transcendentals=0,
            bytes_accessed=int(bytes_accessed)),
    )(*operands)

    # Slice back to the logical (unpadded) shape.
    return out_p[:batch, : dims[-1]]


@jax.jit
def model_forward(x, params):
    """Mirror of Model.forward (the `skip` layer is unused, matching PyTorch)."""
    return fused_mlp(x, params)


def init_params(key, dims):
    """PyTorch-default-style init: U(-1/sqrt(fan_in), 1/sqrt(fan_in))."""
    params = []
    for i in range(len(dims) - 1):
        fan_in, fan_out = dims[i], dims[i + 1]
        key, kw, kb = jax.random.split(key, 3)
        bound = 1.0 / jnp.sqrt(fan_in)
        w = jax.random.uniform(kw, (fan_in, fan_out), jnp.float32, -bound, bound)
        b = jax.random.uniform(kb, (fan_out,), jnp.float32, -bound, bound)
        params.append((w, b))
    # skip: Linear(dims[0], dims[-1], bias=False) — defined but unused in forward.
    key, ks = jax.random.split(key)
    bound = 1.0 / jnp.sqrt(dims[0])
    skip_w = jax.random.uniform(ks, (dims[0], dims[-1]), jnp.float32, -bound, bound)
    return params, skip_w


if __name__ == "__main__":
    # dims consistent with the module spec (len > 2): input=8, hidden=80, out=100.
    dims = (8, 80, 100)
    batch = 4

    key = jax.random.PRNGKey(0)
    key, kx = jax.random.split(key)
    x = jax.random.normal(kx, (batch, dims[0]), jnp.float32)

    params, _skip_w = init_params(key, dims)  # skip weight unused in forward

    out = model_forward(x, params)
    jax.block_until_ready(out)

    # Pure-JAX reference check.
    ref = x
    for i, (w, b) in enumerate(params):
        ref = ref @ w + b
        if i != len(params) - 1:
            ref = jnp.maximum(ref, 0.0)
    assert out.shape == (batch, dims[-1])
    assert jnp.allclose(out, ref, atol=1e-5, rtol=1e-5)

    print("KERNEL_OK")
</pallas_src>

<mosaic_0001>
module attributes {stable_mosaic.version = 11 : i64} {
  func.func @_fused_mlp_kernel(%arg0: memref<8x128xf32, #tpu.memory_space<vmem>>, %arg1: memref<128x128xf32, #tpu.memory_space<vmem>>, %arg2: memref<1x128xf32, #tpu.memory_space<vmem>>, %arg3: memref<128x128xf32, #tpu.memory_space<vmem>>, %arg4: memref<1x128xf32, #tpu.memory_space<vmem>>, %arg5: memref<8x128xf32, #tpu.memory_space<vmem>>) attributes {dimension_semantics = [], scalar_prefetch = 0 : i64, scratch_operands = 0 : i64, tpu.core_type = #tpu.core_type<tc>} {
    %c0 = arith.constant 0 : index
    %c0_0 = arith.constant 0 : index
    %0 = vector.load %arg0[%c0, %c0_0] : memref<8x128xf32, #tpu.memory_space<vmem>>, vector<8x128xf32>
    %c0_1 = arith.constant 0 : index
    %c0_2 = arith.constant 0 : index
    %1 = vector.load %arg1[%c0_1, %c0_2] : memref<128x128xf32, #tpu.memory_space<vmem>>, vector<128x128xf32>
    %cst = arith.constant dense<0.000000e+00> : vector<8x128xf32>
    %2 = tpu.matmul %0, %1, %cst {dimension_numbers = #tpu.dot_dimension_numbers<[1], [0], [0], [1], [0, 0, 1, 1], [], []>} : vector<8x128xf32>, vector<128x128xf32>, vector<8x128xf32> -> vector<8x128xf32>
    %c0_3 = arith.constant 0 : index
    %c0_4 = arith.constant 0 : index
    %3 = vector.load %arg2[%c0_3, %c0_4] : memref<1x128xf32, #tpu.memory_space<vmem>>, vector<1x128xf32>
    %4 = vector.broadcast %3 : vector<1x128xf32> to vector<8x128xf32>
    %5 = arith.addf %2, %4 : vector<8x128xf32>
    %cst_5 = arith.constant 0.000000e+00 : f32
    %6 = vector.broadcast %cst_5 : f32 to vector<8x128xf32>
    %7 = arith.maximumf %5, %6 : vector<8x128xf32>
    %c0_6 = arith.constant 0 : index
    %c0_7 = arith.constant 0 : index
    %8 = vector.load %arg3[%c0_6, %c0_7] : memref<128x128xf32, #tpu.memory_space<vmem>>, vector<128x128xf32>
    %cst_8 = arith.constant dense<0.000000e+00> : vector<8x128xf32>
    %9 = tpu.matmul %7, %8, %cst_8 {dimension_numbers = #tpu.dot_dimension_numbers<[1], [0], [0], [1], [0, 0, 1, 1], [], []>} : vector<8x128xf32>, vector<128x128xf32>, vector<8x128xf32> -> vector<8x128xf32>
    %c0_9 = arith.constant 0 : index
    %c0_10 = arith.constant 0 : index
    %10 = vector.load %arg4[%c0_9, %c0_10] : memref<1x128xf32, #tpu.memory_space<vmem>>, vector<1x128xf32>
    %11 = vector.broadcast %10 : vector<1x128xf32> to vector<8x128xf32>
    %12 = arith.addf %9, %11 : vector<8x128xf32>
    %c0_11 = arith.constant 0 : index
    %c0_12 = arith.constant 0 : index
    %13 = vector.load %arg5[%c0_11, %c0_12] : memref<8x128xf32, #tpu.memory_space<vmem>>, vector<8x128xf32>
    tpu.vector_store %arg5[%c0_11, %c0_12], %12 {strides = array<i32>} : memref<8x128xf32, #tpu.memory_space<vmem>>, vector<8x128xf32>,
    return
  }
}

</mosaic_0001>

<bundles_post_ra>
// kernel: model_forward.1
= control target key start
LH: loop header
LB: loop body
LE: loop exit
PB: predicated region body
PF: predicated region fallthrough
CT: control target
= control target key end

     0   :  { %s247_s1 = inlined_call_operand.vmem [shape: f32[128,128], index: 1, kind: input, shape index: {}]   ;;  %s248_s3 = inlined_call_operand.vmem [shape: f32[128,128], index: 3, kind: input, shape index: {}]   ;;  %s249_s2 = inlined_call_operand.vmem [shape: f32[1,128], index: 2, kind: input, shape index: {}]   ;;  %s250_s0 = inlined_call_operand.vmem [shape: f32[8,128], index: 0, kind: input, shape index: {}]   ;;  %s251_s4 = inlined_call_operand.vmem [shape: f32[1,128], index: 4, kind: input, shape index: {}]   ;;  %s252_s5 = inlined_call_operand.vmem [shape: f32[8,128], index: 5, kind: output, shape index: {}]  }
   0x1   :  { %v36_v0 = vld [vmem:[%s247_s1 + $0x78] sm:$0xff]  ;;  %v35_v1 = vld [vmem:[%s247_s1 + $0x70] sm:$0xff]  ;;  %v34_v2 = vld [vmem:[%s247_s1 + $0x68] sm:$0xff] }
   0x2   :  { %41 = vmatpush.msra.mxu0 %v36_v0  ;;  %v33_v3 = vld [vmem:[%s247_s1 + $0x60] sm:$0xff]  ;;  %v77_v4 = vld [vmem:[%s248_s3 + $0x78] sm:$0xff]  ;;  %v76_v6 = vld [vmem:[%s248_s3 + $0x70] sm:$0xff] }
   0x3   :  { %v32_v5 = vld [vmem:[%s247_s1 + $0x58] sm:$0xff]  ;;  %82 = vmatpush.msra.mxu1 %v77_v4  ;;  %v75_v7 = vld [vmem:[%s248_s3 + $0x68] sm:$0xff]  ;;  %v31_v8 = vld [vmem:[%s247_s1 + $0x50] sm:$0xff] }
   0x4   :  { %42 = vmatpush.msra.mxu0 %v35_v1  ;;  %v74_v9 = vld [vmem:[%s248_s3 + $0x60] sm:$0xff]  ;;  %v30_v10 = vld [vmem:[%s247_s1 + $0x48] sm:$0xff]  ;;  %v73_v11 = vld [vmem:[%s248_s3 + $0x58] sm:$0xff] }
   0x5   :  { %83 = vmatpush.msra.mxu1 %v76_v6  ;;  %v29_v12 = vld [vmem:[%s247_s1 + $0x40] sm:$0xff]  ;;  %v72_v13 = vld [vmem:[%s248_s3 + $0x50] sm:$0xff]  ;;  %v28_v14 = vld [vmem:[%s247_s1 + $0x38] sm:$0xff] }
   0x6   :  { %43 = vmatpush.msra.mxu0 %v34_v2  ;;  %v71_v15 = vld [vmem:[%s248_s3 + $0x48] sm:$0xff]  ;;  %v27_v16 = vld [vmem:[%s247_s1 + $0x30] sm:$0xff]  ;;  %v70_v17 = vld [vmem:[%s248_s3 + $0x40] sm:$0xff] }
   0x7   :  { %84 = vmatpush.msra.mxu1 %v75_v7  ;;  %v26_v18 = vld [vmem:[%s247_s1 + $0x28] sm:$0xff]  ;;  %v69_v19 = vld [vmem:[%s248_s3 + $0x38] sm:$0xff]  ;;  %v25_v20 = vld [vmem:[%s247_s1 + $0x20] sm:$0xff] }
   0x8   :  { %44 = vmatpush.msra.mxu0 %v33_v3  ;;  %v68_v21 = vld [vmem:[%s248_s3 + $0x30] sm:$0xff]  ;;  %v24_v22 = vld [vmem:[%s247_s1 + $0x18] sm:$0xff]  ;;  %v67_v23 = vld [vmem:[%s248_s3 + $0x28] sm:$0xff] }
   0x9   :  { %85 = vmatpush.msra.mxu1 %v74_v9  ;;  %v23_v24 = vld [vmem:[%s247_s1 + $0x10] sm:$0xff]  ;;  %v66_v25 = vld [vmem:[%s248_s3 + $0x20] sm:$0xff]  ;;  %v22_v26 = vld [vmem:[%s247_s1 + $0x8] sm:$0xff] }
   0xa   :  { %45 = vmatpush.msra.mxu0 %v32_v5  ;;  %v65_v27 = vld [vmem:[%s248_s3 + $0x18] sm:$0xff]  ;;  %v21_v28 = vld [vmem:[%s247_s1] sm:$0xff]  ;;  %v64_v30 = vld [vmem:[%s248_s3 + $0x10] sm:$0xff] }
   0xb   :  { %86 = vmatpush.msra.mxu1 %v73_v11  ;;  %v20_v29 = vld [vmem:[%s250_s0] sm:$0xff]  ;;  %v63_v31 = vld [vmem:[%s248_s3 + $0x8] sm:$0xff] }
   0xc   :  { %46 = vmatpush.msra.mxu0 %v31_v8  ;;  %v62_v32 = vld [vmem:[%s248_s3] sm:$0xff] }
   0xd   :  { %87 = vmatpush.msra.mxu1 %v72_v13  ;;  %v107_v33 = vld [vmem:[%s249_s2] ss:$0 sm:$0xff] }
   0xe   :  { %47 = vmatpush.msra.mxu0 %v30_v10  ;;  %v108_v37 = vld [vmem:[%s251_s4] ss:$0 sm:$0xff] }
   0xf   :  { %88 = vmatpush.msra.mxu1 %v71_v15 }
  0x10   :  { %48 = vmatpush.msra.mxu0 %v29_v12 }
  0x11   :  { %89 = vmatpush.msra.mxu1 %v70_v17 }
  0x12   :  { %49 = vmatpush.msra.mxu0 %v28_v14 }
  0x13   :  { %90 = vmatpush.msra.mxu1 %v69_v19 }
  0x14   :  { %50 = vmatpush.msra.mxu0 %v27_v16 }
  0x15   :  { %91 = vmatpush.msra.mxu1 %v68_v21 }
  0x16   :  { %51 = vmatpush.msra.mxu0 %v26_v18 }
  0x17   :  { %92 = vmatpush.msra.mxu1 %v67_v23 }
  0x18   :  { %52 = vmatpush.msra.mxu0 %v25_v20 }
  0x19   :  { %93 = vmatpush.msra.mxu1 %v66_v25 }
  0x1a   :  { %53 = vmatpush.msra.mxu0 %v24_v22 }
  0x1b   :  { %94 = vmatpush.msra.mxu1 %v65_v27 }
  0x1c   :  { %54 = vmatpush.msra.mxu0 %v23_v24 }
  0x1d   :  { %95 = vmatpush.msra.mxu1 %v64_v30 }
  0x1e   :  { %55 = vmatpush.msra.mxu0 %v22_v26 }
  0x1f   :  { %96 = vmatpush.msra.mxu1 %v63_v31 }
  0x20   :  { %56 = vmatpush.msra.mxu0 %v21_v28 }
  0x21   :  { %57 = vmatmul.f32.vlgmr.msra.gmra.mxu0 %v20_v29  ;;  %97 = vmatpush.msra.mxu1 %v62_v32 }
  0x9e   :  { %v58_v34 = vpop.f32.mrf.mxu0 }
  0x9f   :  { %v59_v35 = vadd.f32 %v107_v33, %v58_v34 }
  0xa1   :  { %v61_v36 = vmax.f32 %v59_v35, 0.0 }
  0xa3   :  { %98 = vmatmul.f32.vlgmr.msra.gmra.mxu1 %v61_v36 }
 0x120   :  { %v99_v38 = vpop.f32.mrf.mxu1 }
 0x121   :  { %v100_v39 = vadd.f32 %v108_v37, %v99_v38 }
 0x123   :  { %102 = vst [vmem:[%s252_s5] sm:$0xff] %v100_v39 }

</bundles_post_ra>
